<compile_context>
chip_gen: v7x
topology: tpu7x:2x2x1
jax: 0.10.0
libtpu: 0.0.40
codegen_flags: <defaults>
</compile_context>

<pallas_src>
import functools

import jax
import jax.numpy as jnp
from jax.experimental import pallas as pl
from jax.experimental.pallas import tpu as pltpu

BN_EPS = 1e-5
# > v5e's 16 MiB scoped default, <= v7x's 64 MiB physical VMEM (headroom for compiler scratch).
_VMEM_LIMIT = 48 * 1024 * 1024


def _round_up(v, m):
    return ((v + m - 1) // m) * m


def _pick_block(dim, unit, cap):
    """Largest multiple of `unit` that divides `dim` and is <= cap (dim is a multiple of unit)."""
    cap = min(cap, dim)
    best = unit
    b = unit
    while b <= cap:
        if dim % b == 0:
            best = b
        b += unit
    return best


def _pad2(a, rows, cols):
    r, c = a.shape
    if r == rows and c == cols:
        return a
    return jnp.pad(a, ((0, rows - r), (0, cols - c)))


# ---------------------------------------------------------------------------
# Pallas kernels
# ---------------------------------------------------------------------------
def _matmul_kernel(x_ref, w_ref, s_ref, b_ref, *rest, relu, has_residual):
    if has_residual:
        r_ref, o_ref, acc_ref = rest
    else:
        o_ref, acc_ref = rest

    @pl.when(pl.program_id(2) == 0)
    def _():
        acc_ref[...] = jnp.zeros_like(acc_ref)

    acc_ref[...] += jnp.dot(x_ref[...], w_ref[...],
                            preferred_element_type=jnp.float32)

    @pl.when(pl.program_id(2) == pl.num_programs(2) - 1)
    def _():
        out = acc_ref[...] * s_ref[...] + b_ref[...]
        if has_residual:
            out = out + r_ref[...].astype(jnp.float32)
        if relu:
            out = jnp.maximum(out, 0.0)
        o_ref[...] = out.astype(o_ref.dtype)


def _conv_tap_kernel(x_ref, w_ref, s_ref, b_ref, o_ref, acc_ref, *, offsets, relu):
    """Stride-1 kh*kw conv: accumulate the taps (contiguous row windows of the flattened,
    padded input) into an f32 VMEM scratch, then apply folded BN (+ReLU)."""
    mo = acc_ref.shape[0]
    for t, off in enumerate(offsets):
        tap = x_ref[pl.ds(off, mo), :]                       # (Mo, Cp) bf16, static offset
        contrib = jnp.dot(tap, w_ref[t], preferred_element_type=jnp.float32)
        if t == 0:
            acc_ref[...] = contrib
        else:
            acc_ref[...] += contrib
    out = acc_ref[...] * s_ref[...] + b_ref[...]
    if relu:
        out = jnp.maximum(out, 0.0)
    o_ref[...] = out.astype(o_ref.dtype)


def _avgpool_kernel(x_ref, o_ref, *, pool, cin):
    acc = None
    for py in range(pool):
        row = x_ref[:, py].astype(jnp.float32)               # (bm, Wo, pool*cin)
        for px in range(pool):
            part = row[..., px * cin:(px + 1) * cin]
            acc = part if acc is None else acc + part
    o_ref[...] = (acc * (1.0 / (pool * pool))).astype(o_ref.dtype)


def _attn_pool_kernel(q_ref, k_ref, v_ref, o_ref, *, scale):
    s = jnp.einsum('bqd,bkd->bqk', q_ref[...], k_ref[...],
                   preferred_element_type=jnp.float32) * scale
    m = jnp.max(s, axis=-1, keepdims=True)
    e = jnp.exp(s - m)
    p = (e / jnp.sum(e, axis=-1, keepdims=True)).astype(v_ref.dtype)
    o_ref[...] = jnp.einsum('bqk,bkd->bqd', p, v_ref[...],
                            preferred_element_type=jnp.float32)


# ---------------------------------------------------------------------------
# Kernel wrappers
# ---------------------------------------------------------------------------
def fused_matmul(x, w, scale, bias, residual=None, relu=False,
                 out_dtype=jnp.bfloat16, tm=512, tn=512, tk=512):
    """y = (x @ w) * scale + bias (+ residual) (+ReLU), tiled & pipelined on the MXU.

    Weights are expected pre-padded/pre-cast (128-multiples, bf16); block sizes are divisors of
    the padded dims so no extra tile-width padding is introduced.  Returns (M, Np); callers
    slice valid columns."""
    M, K = x.shape
    Kw, Nw = w.shape
    Kp = _round_up(max(K, Kw), 128)
    Np = _round_up(Nw, 128)
    Mp = _round_up(M, 8)
    bm = _pick_block(Mp, 8, tm)
    bn = _pick_block(Np, 128, tn)
    bk = _pick_block(Kp, 128, tk)

    xp = _pad2(x.astype(jnp.bfloat16), Mp, Kp)
    wp = _pad2(w if w.dtype == jnp.bfloat16 else w.astype(jnp.bfloat16), Kp, Np)
    sp = _pad2(scale.reshape(1, -1).astype(jnp.float32), 1, Np)
    bp = _pad2(bias.reshape(1, -1).astype(jnp.float32), 1, Np)

    in_specs = [
        pl.BlockSpec((bm, bk), lambda i, j, k: (i, k)),
        pl.BlockSpec((bk, bn), lambda i, j, k: (k, j)),
        pl.BlockSpec((1, bn), lambda i, j, k: (0, j)),
        pl.BlockSpec((1, bn), lambda i, j, k: (0, j)),
    ]
    args = [xp, wp, sp, bp]
    has_res = residual is not None
    if has_res:
        rp = _pad2(residual.astype(jnp.bfloat16), Mp, Np)
        in_specs.append(pl.BlockSpec((bm, bn), lambda i, j, k: (i, j)))
        args.append(rp)

    out = pl.pallas_call(
        functools.partial(_matmul_kernel, relu=relu, has_residual=has_res),
        out_shape=jax.ShapeDtypeStruct((Mp, Np), out_dtype),
        grid=(Mp // bm, Np // bn, Kp // bk),
        in_specs=in_specs,
        out_specs=pl.BlockSpec((bm, bn), lambda i, j, k: (i, j)),
        scratch_shapes=[pltpu.VMEM((bm, bn), jnp.float32)],
        compiler_params=pltpu.CompilerParams(
            dimension_semantics=("parallel", "parallel", "arbitrary"),
            vmem_limit_bytes=_VMEM_LIMIT),
    )(*args)
    return out[:M]


def conv_taps(x, cp, *, pad, relu):
    """Stride-1 kh*kw conv + folded BN (+ReLU).  The only HBM copy is one padded, flattened
    view of the input (no 9x patch matrix)."""
    N, H, W, C = x.shape
    kh, kw, cout = cp['kh'], cp['kw'], cp['cout']
    T, cinp, coutp = cp['w'].shape
    Hp, Wp = H + 2 * pad, W + 2 * pad
    Ho, Wo = Hp - kh + 1, Wp - kw + 1
    # One extra padded row keeps every tap's row window in bounds after flattening.
    xp = jnp.pad(x.astype(jnp.bfloat16),
                 ((0, 0), (pad, pad + 1), (pad, pad), (0, cinp - C)))
    Lp = (Hp + 1) * Wp
    xf = xp.reshape(N, Lp, cinp)
    Mo = Ho * Wp                      # extended rows; columns >= Wo are sliced off below
    offsets = tuple(ky * Wp + kx for ky in range(kh) for kx in range(kw))
    bn = _pick_block(coutp, 128, 256)

    out = pl.pallas_call(
        functools.partial(_conv_tap_kernel, offsets=offsets, relu=relu),
        out_shape=jax.ShapeDtypeStruct((N, Mo, coutp), jnp.bfloat16),
        grid=(N, coutp // bn),
        in_specs=[
            pl.BlockSpec((None, Lp, cinp), lambda n, j: (n, 0, 0)),
            pl.BlockSpec((T, cinp, bn), lambda n, j: (0, 0, j)),
            pl.BlockSpec((1, bn), lambda n, j: (0, j)),
            pl.BlockSpec((1, bn), lambda n, j: (0, j)),
        ],
        out_specs=pl.BlockSpec((None, Mo, bn), lambda n, j: (n, 0, j)),
        scratch_shapes=[pltpu.VMEM((Mo, bn), jnp.float32)],
        compiler_params=pltpu.CompilerParams(
            dimension_semantics=("parallel", "parallel"),
            vmem_limit_bytes=_VMEM_LIMIT),
    )(xf, cp['w'], cp['scale'], cp['bias'])
    return out.reshape(N, Ho, Wp, coutp)[:, :, :Wo, :cout]


def avgpool(x, pool):
    """AvgPool2d(pool): single Pallas pass over a free NHWC reshape (no tap copies in HBM)."""
    N, H, W, C = x.shape
    Ho, Wo = H // pool, W // pool
    R = N * Ho
    xr = x.reshape(R, pool, Wo, pool * C)           # free reshape of contiguous NHWC
    bm = _pick_block(R, 1, 128)
    y = pl.pallas_call(
        functools.partial(_avgpool_kernel, pool=pool, cin=C),
        out_shape=jax.ShapeDtypeStruct((R, Wo, C), x.dtype),
        grid=(R // bm,),
        in_specs=[pl.BlockSpec((bm, pool, Wo, pool * C), lambda i: (i, 0, 0, 0))],
        out_specs=pl.BlockSpec((bm, Wo, C), lambda i: (i, 0, 0)),
        compiler_params=pltpu.CompilerParams(dimension_semantics=("parallel",),
                                             vmem_limit_bytes=_VMEM_LIMIT),
    )(xr)
    return y.reshape(N, Ho, Wo, C)


def attn_pool_core(qh, kh_, vh, scale):
    BH, _, D = qh.shape
    L = kh_.shape[1]
    bb = _pick_block(BH, 1, 16)
    return pl.pallas_call(
        functools.partial(_attn_pool_kernel, scale=scale),
        out_shape=jax.ShapeDtypeStruct((BH, 1, D), jnp.float32),
        grid=(BH // bb,),
        in_specs=[pl.BlockSpec((bb, 1, D), lambda i: (i, 0, 0)),
                  pl.BlockSpec((bb, L, D), lambda i: (i, 0, 0)),
                  pl.BlockSpec((bb, L, D), lambda i: (i, 0, 0))],
        out_specs=pl.BlockSpec((bb, 1, D), lambda i: (i, 0, 0)),
        compiler_params=pltpu.CompilerParams(dimension_semantics=("parallel",),
                                             vmem_limit_bytes=_VMEM_LIMIT),
    )(qh, kh_, vh)


# ---------------------------------------------------------------------------
# JAX glue: im2col fallback (stride-2 stem conv only), conv dispatch
# ---------------------------------------------------------------------------
def im2col(x, kh, kw, stride=1, pad=0):
    N, H, W, C = x.shape
    if pad:
        x = jnp.pad(x, ((0, 0), (pad, pad), (pad, pad), (0, 0)))
    Ho = (H + 2 * pad - kh) // stride + 1
    Wo = (W + 2 * pad - kw) // stride + 1
    cols = []
    for ky in range(kh):
        for kx in range(kw):
            cols.append(x[:, ky:ky + stride * (Ho - 1) + 1:stride,
                          kx:kx + stride * (Wo - 1) + 1:stride, :])
    patches = jnp.stack(cols, axis=3)
    return patches.reshape(N * Ho * Wo, kh * kw * C), (N, Ho, Wo)


def conv_bn(x, cp, *, stride=1, pad=0, relu=False, residual=None):
    N, H, W, _ = x.shape
    cout = cp['cout']
    if cp['kind'] == '1x1':
        M = N * H * W
        res = None if residual is None else residual.reshape(M, cout)
        y = fused_matmul(x.reshape(M, -1), cp['w'], cp['scale'], cp['bias'],
                         residual=res, relu=relu)
        return y[:, :cout].reshape(N, H, W, cout)
    if cp['kind'] == 'taps':
        assert stride == 1
        return conv_taps(x, cp, pad=pad, relu=relu)
    # strided kxk fallback (stem conv1 only; overlapping strided windows are not BlockSpec-able)
    patches, (N, Ho, Wo) = im2col(x, cp['kh'], cp['kw'], stride, pad)
    y = fused_matmul(patches, cp['w'], cp['scale'], cp['bias'], relu=relu)
    return y[:, :cout].reshape(N, Ho, Wo, cout)


# ---------------------------------------------------------------------------
# Model forward
# ---------------------------------------------------------------------------
def bottleneck(x, bp):
    stride = bp['stride']
    out = conv_bn(x, bp['conv1'], relu=True)                   # 1x1 + bn1 + relu
    out = conv_bn(out, bp['conv2'], pad=1, relu=True)          # 3x3 + bn2 + relu (fused taps)
    if stride > 1:
        out = avgpool(out, stride)                             # anti-alias pool
    if bp['down'] is not None:
        idn = avgpool(x, stride) if stride > 1 else x
        identity = conv_bn(idn, bp['down'])
    else:
        identity = x
    # conv3 (1x1) + bn3 + residual add + relu fused into one matmul epilogue
    return conv_bn(out, bp['conv3'], relu=True, residual=identity)


def attention_pool(x, ap, heads):
    N, H, W, C = x.shape
    tokens = x.reshape(N, H * W, C).astype(jnp.float32)
    mean_tok = jnp.mean(tokens, axis=1, keepdims=True)
    seq = jnp.concatenate([mean_tok, tokens], axis=1) + ap['pos'][None]     # (N, L, C)
    L = seq.shape[1]
    q = fused_matmul(seq[:, 0, :], ap['q']['w'], ap['q']['scale'], ap['q']['bias'])[:, :C]
    seq2 = seq.reshape(N * L, C)
    k = fused_matmul(seq2, ap['k']['w'], ap['k']['scale'], ap['k']['bias'])[:, :C]
    v = fused_matmul(seq2, ap['v']['w'], ap['v']['scale'], ap['v']['bias'])[:, :C]
    hd = C // heads
    qh = q.reshape(N * heads, 1, hd)                                         # bf16 head split
    kh_ = k.reshape(N, L, heads, hd).transpose(0, 2, 1, 3).reshape(N * heads, L, hd)
    vh = v.reshape(N, L, heads, hd).transpose(0, 2, 1, 3).reshape(N * heads, L, hd)
    o = attn_pool_core(qh, kh_, vh, hd ** -0.5).reshape(N, C)                # f32
    out = fused_matmul(o, ap['c']['w'], ap['c']['scale'], ap['c']['bias'],
                       out_dtype=jnp.float32)
    return out[:, :ap['c']['cout']]


def modified_resnet_forward(x_nchw, prep, heads):
    x = jnp.transpose(x_nchw, (0, 2, 3, 1)).astype(jnp.bfloat16)            # NCHW -> NHWC, bf16
    s1, s2, s3 = prep['stem']
    x = conv_bn(x, s1, stride=2, pad=1, relu=True)
    x = conv_bn(x, s2, pad=1, relu=True)
    x = conv_bn(x, s3, pad=1, relu=True)
    x = avgpool(x, 2)
    for layer in prep['layers']:
        for blk in layer:
            x = bottleneck(x, blk)
    return attention_pool(x, prep['attnpool'], heads)


# ---------------------------------------------------------------------------
# Parameter preparation (BN folding with running stats, bf16 pre-cast, pre-pad, pre-transpose)
# ---------------------------------------------------------------------------
def _fold_bn(p):
    scale = p['g'] / jnp.sqrt(p['v'] + BN_EPS)
    bias = p['b'] - p['m'] * scale
    return scale, bias


def _prep_conv(p, stride=1):
    w = p['w']
    kh, kw, cin, cout = w.shape
    scale, bias = _fold_bn(p)
    cinp, coutp = _round_up(cin, 128), _round_up(cout, 128)
    d = {'kh': kh, 'kw': kw, 'cin': cin, 'cout': cout,
         'scale': jnp.pad(scale, (0, coutp - cout)).reshape(1, coutp).astype(jnp.float32),
         'bias': jnp.pad(bias, (0, coutp - cout)).reshape(1, coutp).astype(jnp.float32)}
    if kh == 1 and kw == 1:
        d['kind'] = '1x1'
        d['w'] = jnp.pad(w.reshape(cin, cout),
                         ((0, cinp - cin), (0, coutp - cout))).astype(jnp.bfloat16)
    elif stride == 1:
        d['kind'] = 'taps'
        wt = jnp.pad(w, ((0, 0), (0, 0), (0, cinp - cin), (0, coutp - cout)))
        d['w'] = wt.reshape(kh * kw, cinp, coutp).astype(jnp.bfloat16)
    else:
        d['kind'] = 'im2col'
        kcin = kh * kw * cin
        d['w'] = jnp.pad(w.reshape(kcin, cout),
                         ((0, _round_up(kcin, 128) - kcin),
                          (0, coutp - cout))).astype(jnp.bfloat16)
    return d


def _prep_linear(p):
    w, b = p['w'], p['b']                                   # torch layout (out, in)
    out_f, in_f = w.shape
    inp, outp = _round_up(in_f, 128), _round_up(out_f, 128)
    return {'w': jnp.pad(w.T, ((0, inp - in_f), (0, outp - out_f))).astype(jnp.bfloat16),
            'scale': jnp.ones((1, outp), jnp.float32),
            'bias': jnp.pad(b, (0, outp - out_f)).reshape(1, outp).astype(jnp.float32),
            'cout': out_f}


def prepare_params(params):
    prep = {'stem': [_prep_conv(params['stem'][0], stride=2),
                     _prep_conv(params['stem'][1]),
                     _prep_conv(params['stem'][2])]}
    layers = []
    for layer in params['layers']:
        blks = []
        for b in layer:
            blks.append({'stride': b['stride'],
                         'conv1': _prep_conv(b['conv1']),
                         'conv2': _prep_conv(b['conv2']),
                         'conv3': _prep_conv(b['conv3']),
                         'down': _prep_conv(b['down']) if 'down' in b else None})
        layers.append(blks)
    prep['layers'] = layers
    ap = params['attnpool']
    prep['attnpool'] = {'pos': ap['pos'],
                        'q': _prep_linear(ap['q']), 'k': _prep_linear(ap['k']),
                        'v': _prep_linear(ap['v']), 'c': _prep_linear(ap['c'])}
    return prep


# ---------------------------------------------------------------------------
# Deterministic raw-parameter construction (same shapes/init intent as the PyTorch __init__)
# ---------------------------------------------------------------------------
def make_params(layers, output_dim, heads, input_resolution, width, key):
    keys = iter(jax.random.split(key, 1024))

    def conv_bn_raw(cin, cout, k):
        fan_in = cin * k * k
        return {'w': jax.random.normal(next(keys), (k, k, cin, cout), jnp.float32) * fan_in ** -0.5,
                'g': jnp.ones((cout,), jnp.float32), 'b': jnp.zeros((cout,), jnp.float32),
                'm': jnp.zeros((cout,), jnp.float32), 'v': jnp.ones((cout,), jnp.float32)}

    params = {'stem': [conv_bn_raw(3, width // 2, 3),
                       conv_bn_raw(width // 2, width // 2, 3),
                       conv_bn_raw(width // 2, width, 3)]}

    def bottleneck_raw(inplanes, planes, stride):
        out = planes * 4
        p = {'stride': stride,
             'conv1': conv_bn_raw(inplanes, planes, 1),
             'conv2': conv_bn_raw(planes, planes, 3),
             'conv3': conv_bn_raw(planes, out, 1)}
        p['conv3']['g'] = jnp.zeros((out,), jnp.float32)    # initialize_parameters(): bn3.weight = 0
        if stride > 1 or inplanes != out:
            p['down'] = conv_bn_raw(inplanes, out, 1)
        return p

    inplanes = width
    all_layers = []
    for li, (blocks, stride) in enumerate(zip(layers, (1, 2, 2, 2))):
        planes = width * (2 ** li)
        blks = [bottleneck_raw(inplanes, planes, stride)]
        inplanes = planes * 4
        for _ in range(1, blocks):
            blks.append(bottleneck_raw(inplanes, planes, 1))
        all_layers.append(blks)
    params['layers'] = all_layers

    embed_dim = width * 32
    spacial = input_resolution // 32
    std = embed_dim ** -0.5

    def linear_raw(in_f, out_f):
        return {'w': jax.random.normal(next(keys), (out_f, in_f), jnp.float32) * std,
                'b': jnp.zeros((out_f,), jnp.float32)}

    params['attnpool'] = {
        'pos': jax.random.normal(next(keys), (spacial * spacial + 1, embed_dim), jnp.float32) * std,
        'q': linear_raw(embed_dim, embed_dim), 'k': linear_raw(embed_dim, embed_dim),
        'v': linear_raw(embed_dim, embed_dim), 'c': linear_raw(embed_dim, output_dim)}
    return params


if __name__ == "__main__":
    LAYERS = (1, 1, 1, 1)    # one Bottleneck per stage (small synthetic config)
    OUTPUT_DIM = 16
    HEADS = 4
    INPUT_RES = 32           # -> final feature map is 1x1, attnpool spacial_dim = 1
    WIDTH = 8                # -> embed_dim = width*32 = 256
    BATCH = 2

    key = jax.random.PRNGKey(0)
    pkey, xkey = jax.random.split(key)
    raw_params = make_params(LAYERS, OUTPUT_DIM, HEADS, INPUT_RES, WIDTH, pkey)
    prep = prepare_params(raw_params)
    x = jax.random.normal(xkey, (BATCH, 3, INPUT_RES, INPUT_RES), jnp.float32)  # NCHW like PyTorch

    out = modified_resnet_forward(x, prep, HEADS)
    out = jax.block_until_ready(out)
    assert out.shape == (BATCH, OUTPUT_DIM)
    assert bool(jnp.all(jnp.isfinite(out)))
    print("KERNEL_OK")
</pallas_src>

<mosaic_0001>
module attributes {stable_mosaic.version = 11 : i64} {
  func.func @_matmul_kernel(%arg0: i32, %arg1: i32, %arg2: i32, %arg3: memref<512x128xbf16, #tpu.memory_space<vmem>>, %arg4: memref<128x128xbf16, #tpu.memory_space<vmem>>, %arg5: memref<1x128xf32, #tpu.memory_space<vmem>>, %arg6: memref<1x128xf32, #tpu.memory_space<vmem>>, %arg7: memref<512x128xbf16, #tpu.memory_space<vmem>>, %arg8: memref<512x128xf32, #tpu.memory_space<vmem>>) attributes {dimension_semantics = [#tpu.dimension_semantics<parallel>, #tpu.dimension_semantics<parallel>, #tpu.dimension_semantics<arbitrary>], iteration_bounds = array<i64: 1, 1, 1>, scalar_prefetch = 0 : i64, scratch_operands = 1 : i64, tpu.core_type = #tpu.core_type<tc>, window_params = [{transform_indices = @transform_0, window_bounds = array<i64: 512, 128>}, {transform_indices = @transform_1, window_bounds = array<i64: 128, 128>}, {transform_indices = @transform_2, window_bounds = array<i64: 1, 128>}, {transform_indices = @transform_3, window_bounds = array<i64: 1, 128>}, {transform_indices = @transform_4, window_bounds = array<i64: 512, 128>}]} {
    %c0_i32 = arith.constant 0 : i32
    %0 = arith.cmpi eq, %arg2, %c0_i32 : i32
    %1 = arith.extui %0 : i1 to i32
    %c0_i32_0 = arith.constant 0 : i32
    %2 = arith.cmpi ne, %1, %c0_i32_0 : i32
    scf.if %2 {
      %cst_10 = arith.constant 0.000000e+00 : f32
      %12 = vector.broadcast %cst_10 : f32 to vector<512x128xf32>
      %c0_11 = arith.constant 0 : index
      %c0_12 = arith.constant 0 : index
      %13 = vector.load %arg8[%c0_11, %c0_12] : memref<512x128xf32, #tpu.memory_space<vmem>>, vector<512x128xf32>
      tpu.vector_store %arg8[%c0_11, %c0_12], %12 {strides = array<i32>} : memref<512x128xf32, #tpu.memory_space<vmem>>, vector<512x128xf32>,
    } else {
    }
    %c0 = arith.constant 0 : index
    %c0_1 = arith.constant 0 : index
    %3 = vector.load %arg8[%c0, %c0_1] : memref<512x128xf32, #tpu.memory_space<vmem>>, vector<512x128xf32>
    %c0_2 = arith.constant 0 : index
    %c0_3 = arith.constant 0 : index
    %4 = vector.load %arg3[%c0_2, %c0_3] : memref<512x128xbf16, #tpu.memory_space<vmem>>, vector<512x128xbf16>
    %c0_4 = arith.constant 0 : index
    %c0_5 = arith.constant 0 : index
    %5 = vector.load %arg4[%c0_4, %c0_5] : memref<128x128xbf16, #tpu.memory_space<vmem>>, vector<128x128xbf16>
    %cst = arith.constant dense<0.000000e+00> : vector<512x128xf32>
    %6 = tpu.matmul %4, %5, %cst {dimension_numbers = #tpu.dot_dimension_numbers<[1], [0], [0], [1], [0, 0, 1, 1], [], []>} : vector<512x128xbf16>, vector<128x128xbf16>, vector<512x128xf32> -> vector<512x128xf32>
    %7 = arith.addf %3, %6 : vector<512x128xf32>
    %c0_6 = arith.constant 0 : index
    %c0_7 = arith.constant 0 : index
    %8 = vector.load %arg8[%c0_6, %c0_7] : memref<512x128xf32, #tpu.memory_space<vmem>>, vector<512x128xf32>
    tpu.vector_store %arg8[%c0_6, %c0_7], %7 {strides = array<i32>} : memref<512x128xf32, #tpu.memory_space<vmem>>, vector<512x128xf32>,
    %c0_i32_8 = arith.constant 0 : i32
    %9 = arith.cmpi eq, %arg2, %c0_i32_8 : i32
    %10 = arith.extui %9 : i1 to i32
    %c0_i32_9 = arith.constant 0 : i32
    %11 = arith.cmpi ne, %10, %c0_i32_9 : i32
    scf.if %11 {
      %c0_10 = arith.constant 0 : index
      %c0_11 = arith.constant 0 : index
      %12 = vector.load %arg8[%c0_10, %c0_11] : memref<512x128xf32, #tpu.memory_space<vmem>>, vector<512x128xf32>
      %c0_12 = arith.constant 0 : index
      %c0_13 = arith.constant 0 : index
      %13 = vector.load %arg5[%c0_12, %c0_13] : memref<1x128xf32, #tpu.memory_space<vmem>>, vector<1x128xf32>
      %14 = vector.broadcast %13 : vector<1x128xf32> to vector<512x128xf32>
      %15 = arith.mulf %12, %14 : vector<512x128xf32>
      %c0_14 = arith.constant 0 : index
      %c0_15 = arith.constant 0 : index
      %16 = vector.load %arg6[%c0_14, %c0_15] : memref<1x128xf32, #tpu.memory_space<vmem>>, vector<1x128xf32>
      %17 = vector.broadcast %16 : vector<1x128xf32> to vector<512x128xf32>
      %18 = arith.addf %15, %17 : vector<512x128xf32>
      %cst_16 = arith.constant 0.000000e+00 : f32
      %19 = vector.broadcast %cst_16 : f32 to vector<512x128xf32>
      %20 = arith.maximumf %18, %19 : vector<512x128xf32>
      %21 = arith.truncf %20 : vector<512x128xf32> to vector<512x128xbf16>
      %c0_17 = arith.constant 0 : index
      %c0_18 = arith.constant 0 : index
      %22 = vector.load %arg7[%c0_17, %c0_18] : memref<512x128xbf16, #tpu.memory_space<vmem>>, vector<512x128xbf16>
      tpu.vector_store %arg7[%c0_17, %c0_18], %21 {strides = array<i32>} : memref<512x128xbf16, #tpu.memory_space<vmem>>, vector<512x128xbf16>,
    } else {
    }
    return
  }
  func.func @transform_0(%arg0: i32, %arg1: i32, %arg2: i32) -> (i32, i32) {
    %c0_i32 = arith.constant 0 : i32
    return %arg0, %arg2 : i32, i32
  }
  func.func @transform_1(%arg0: i32, %arg1: i32, %arg2: i32) -> (i32, i32) {
    %c0_i32 = arith.constant 0 : i32
    return %arg2, %arg1 : i32, i32
  }
  func.func @transform_2(%arg0: i32, %arg1: i32, %arg2: i32) -> (i32, i32) {
    %c0_i32 = arith.constant 0 : i32
    %c0_i32_0 = arith.constant 0 : i32
    return %c0_i32, %arg1 : i32, i32
  }
  func.func @transform_3(%arg0: i32, %arg1: i32, %arg2: i32) -> (i32, i32) {
    %c0_i32 = arith.constant 0 : i32
    %c0_i32_0 = arith.constant 0 : i32
    return %c0_i32, %arg1 : i32, i32
  }
  func.func @transform_4(%arg0: i32, %arg1: i32, %arg2: i32) -> (i32, i32) {
    %c0_i32 = arith.constant 0 : i32
    return %arg0, %arg1 : i32, i32
  }
}

</mosaic_0001>

<bundles_post_ra>
// kernel: tpu_custom_call.1
= control target key start
LH: loop header
LB: loop body
LE: loop exit
PB: predicated region body
PF: predicated region fallthrough
CT: control target
= control target key end

     0   :  { %9 = vsyncpa [#allocation4], 0  ;;  %s2354_s0 = inlined_call_operand.hbm [shape: bf16[512,128], index: 0, kind: input, shape index: {}]   ;;  %s2355_s1 = inlined_call_operand.hbm [shape: bf16[128,128], index: 1, kind: input, shape index: {}]   ;;  %s2356_s2 = inlined_call_operand.vmem [shape: f32[1,128], index: 2, kind: input, shape index: {}]   ;;  %s2357_s3 = inlined_call_operand.vmem [shape: f32[1,128], index: 3, kind: input, shape index: {}]   ;;  %s2358_s4 = inlined_call_operand.hbm [shape: bf16[512,128], index: 4, kind: output, shape index: {}]  }
   0x1   :  { %10 = vsyncpa [#allocation7], 0 }
   0x2   :  { %11 = vsyncpa [#allocation5], 0  ;;  %s2141_s15 = smov [#allocation3]   ;;  %s2069_s19 = scalar_lea.hbm %s2354_s0, 4096 }
   0x3   :  { %s17_s16 = sshll.u32 %s2141_s15, 4  ;;  %p2070_p0 = scmp.ne.s32.totalorder %s2354_s0, %s2069_s19  ;;  %s18_s16 = int_to_ptr.vmem [resolvable:$true] %s17_s16 }
   0x4   :  { %p2073_p1 = scmp.lt.u32.totalorder %s2069_s19, %s2354_s0 }
   0x6   :  { %p2075_p2 = pnand %p2073_p1, %p2070_p0 }
   0x8   :  { %2078 = shalt.err (!%p2075_p2)
}
   0x9   :  { %s2079_s24 = scalar_lea.vmem %s18_s16, 4096  ;;  %p2084_p4 = scmp.lt.s32.totalorder %s18_s16, %s18_s16 }
   0xa   :  { %p2080_p3 = scmp.ne.s32.totalorder %s18_s16, %s2079_s24  ;;  %p2085_p5 = scmp.lt.s32.totalorder %s2079_s24, %s2079_s24 }
   0xc   :  { %p2086_p6 = por %p2085_p5, %p2084_p4 }
   0xe   :  { %p2087_p7 = pnand %p2086_p6, %p2080_p3 }
  0x10   :  { %2090 = shalt.err (!%p2087_p7)
}
  0x11   :  { %s2142_s25 = smov 64   ;;  %s2143_s26 = smov 4  }
  0x12   :  { %23 = dma.hbm_to_vmem [thread:$0]  %s2354_s0, 4096, %s18_s16, [#allocation4], %s2142_s25, %s2142_s25, %s2143_s26  }
  0x13   :  { %s2144_s29 = smov [#allocation6]   ;;  %s2091_s7 = scalar_lea.hbm %s2355_s1, 1024 }
  0x14   :  { %s29_s30 = sshll.u32 %s2144_s29, 4  ;;  %p2092_p8 = scmp.ne.s32.totalorder %s2355_s1, %s2091_s7  ;;  %s30_s30 = int_to_ptr.vmem [resolvable:$true] %s29_s30 }
  0x15   :  { %p2095_p9 = scmp.lt.u32.totalorder %s2091_s7, %s2355_s1 }
  0x17   :  { %p2097_p10 = pnand %p2095_p9, %p2092_p8 }
  0x19   :  { %2100 = shalt.err (!%p2097_p10)
}
  0x1a   :  { %s2101_s12 = scalar_lea.vmem %s30_s30, 1024  ;;  %p2106_p12 = scmp.lt.s32.totalorder %s30_s30, %s30_s30 }
  0x1b   :  { %p2102_p11 = scmp.ne.s32.totalorder %s30_s30, %s2101_s12  ;;  %p2107_p13 = scmp.lt.s32.totalorder %s2101_s12, %s2101_s12 }
  0x1d   :  { %p2108_p0 = por %p2107_p13, %p2106_p12 }
  0x1f   :  { %p2109_p1 = pnand %p2108_p0, %p2102_p11 }
  0x21   :  { %2112 = shalt.err (!%p2109_p1)
}
  0x22   :  { %35 = dma.hbm_to_vmem [thread:$0]  %s2355_s1, 1024, %s30_s30, [#allocation7], %s2142_s25, %s2142_s25, %s2143_s26  }
  0x23   :  { %2135 = dma.done.wait [#allocation4], 4096  }
  0x24   :  { %2136 = vsyncadd [#allocation4], 4294963200 }
  0x25   :  { %2137 = dma.done.wait [#allocation7], 1024  }
  0x26   :  { %2138 = vsyncadd [#allocation7], 4294966272  ;;  %v2029_v0 = vld [vmem:[#allocation6] sm:$0xff]   ;;  %v2030_v1 = vld [vmem:[#allocation6 + $0x8] sm:$0xff]  }
  0x27   :  { %1928 = vmatprep.subr.bf16.mxu0 %v2029_v0  ;;  %2008 = vmatprep.subr.bf16.mxu1 %v2029_v0  ;;  %v2031_v2 = vld [vmem:[#allocation6 + $0x10] sm:$0xff]   ;;  %v2032_v3 = vld [vmem:[#allocation6 + $0x18] sm:$0xff]   ;;  %v2037_v4 = vld [vmem:[#allocation3] sm:$0xff]  }
  0x28   :  { %1929 = vmatpush3.bf16.msra.mxu0 %v2029_v0  ;;  %2016 = vmatpush3.bf16.msra.mxu1 %v2029_v0  ;;  %v2038_v5 = vld [vmem:[#allocation3 + $0x80] sm:$0xff]   ;;  %v2034_v7 = vld [vmem:[#allocation6 + $0x28] sm:$0xff]   ;;  %v2035_v8 = vld [vmem:[#allocation6 + $0x30] sm:$0xff]  }
  0x29   :  { %1930 = vmatprep.subr.bf16.mxu0 %v2030_v1  ;;  %2009 = vmatprep.subr.bf16.mxu1 %v2030_v1  ;;  %v2033_v6 = vld [vmem:[#allocation6 + $0x20] sm:$0xff]   ;;  %v2036_v9 = vld [vmem:[#allocation6 + $0x38] sm:$0xff]   ;;  %v2039_v10 = vld [vmem:[#allocation3 + $0x8] sm:$0xff]  }
  0x2a   :  { %1944 = vmatprep.mubr.bf16.mxu0 %v2037_v4  ;;  %1976 = vmatprep.mubr.bf16.mxu1 %v2038_v5  ;;  %v2040_v11 = vld [vmem:[#allocation3 + $0x88] sm:$0xff]   ;;  %v2041_v12 = vld [vmem:[#allocation3 + $0x10] sm:$0xff]   ;;  %v2043_v14 = vld [vmem:[#allocation3 + $0x18] sm:$0xff]  }
  0x2b   :  { %v2042_v13 = vld [vmem:[#allocation3 + $0x90] sm:$0xff]   ;;  %v2044_v15 = vld [vmem:[#allocation3 + $0x98] sm:$0xff]   ;;  %v2045_v16 = vld [vmem:[#allocation3 + $0x20] sm:$0xff]  }
  0x2c   :  { %1931 = vmatpush3.bf16.msra.mxu0 %v2030_v1  ;;  %2017 = vmatpush3.bf16.msra.mxu1 %v2030_v1  ;;  %v2046_v17 = vld [vmem:[#allocation3 + $0xa0] sm:$0xff]   ;;  %v2047_v18 = vld [vmem:[#allocation3 + $0x28] sm:$0xff]   ;;  %v2049_v20 = vld [vmem:[#allocation3 + $0x30] sm:$0xff]  }
  0x2d   :  { %1932 = vmatprep.subr.bf16.mxu0 %v2031_v2  ;;  %2010 = vmatprep.subr.bf16.mxu1 %v2031_v2  ;;  %v2048_v19 = vld [vmem:[#allocation3 + $0xa8] sm:$0xff]   ;;  %v2050_v21 = vld [vmem:[#allocation3 + $0xb0] sm:$0xff]   ;;  %v2051_v22 = vld [vmem:[#allocation3 + $0x38] sm:$0xff]  }
  0x2e   :  { %v2052_v23 = vld [vmem:[#allocation3 + $0xb8] sm:$0xff]   ;;  %v2053_v24 = vld [vmem:[#allocation3 + $0x40] sm:$0xff]   ;;  %v2055_v26 = vld [vmem:[#allocation3 + $0x48] sm:$0xff]  }
  0x2f   :  { %v2054_v25 = vld [vmem:[#allocation3 + $0xc0] sm:$0xff]   ;;  %v2056_v27 = vld [vmem:[#allocation3 + $0xc8] sm:$0xff]   ;;  %v2057_v28 = vld [vmem:[#allocation3 + $0x50] sm:$0xff]  }
  0x30   :  { %1933 = vmatpush3.bf16.msra.mxu0 %v2031_v2  ;;  %2018 = vmatpush3.bf16.msra.mxu1 %v2031_v2  ;;  %v2058_v29 = vld [vmem:[#allocation3 + $0xd0] sm:$0xff]   ;;  %v2059_v30 = vld [vmem:[#allocation3 + $0x58] sm:$0xff]   ;;  %v2061_v32 = vld [vmem:[#allocation3 + $0x60] sm:$0xff]  }
  0x31   :  { %1934 = vmatprep.subr.bf16.mxu0 %v2032_v3  ;;  %2011 = vmatprep.subr.bf16.mxu1 %v2032_v3  ;;  %v2060_v31 = vld [vmem:[#allocation3 + $0xd8] sm:$0xff]   ;;  %v2062_v33 = vld [vmem:[#allocation3 + $0xe0] sm:$0xff]   ;;  %v2063_v34 = vld [vmem:[#allocation3 + $0x68] sm:$0xff]  }
  0x32   :  { %v2064_v35 = vld [vmem:[#allocation3 + $0xe8] sm:$0xff]   ;;  %v2065_v36 = vld [vmem:[#allocation3 + $0x70] sm:$0xff]   ;;  %v2067_v38 = vld [vmem:[#allocation3 + $0x78] sm:$0xff]  }
  0x33   :  { %v2066_v37 = vld [vmem:[#allocation3 + $0xf0] sm:$0xff]   ;;  %v2068_v39 = vld [vmem:[#allocation3 + $0xf8] sm:$0xff]   ;;  %v2204_v40 = vld [vmem:[%s2356_s2] ss:$0 sm:$0xff]  ;;  %s2145_s2 = smov [#allocation8]  }
  0x34   :  { %1935 = vmatpush3.bf16.msra.mxu0 %v2032_v3  ;;  %2019 = vmatpush3.bf16.msra.mxu1 %v2032_v3  ;;  %v2209_v42 = vld [vmem:[%s2357_s3] ss:$0 sm:$0xff]  ;;  %s1514_s3 = sshll.u32 %s2145_s2, 4  ;;  %s1515_s3 = int_to_ptr.vmem [resolvable:$true] %s1514_s3 }
  0x35   :  { %1936 = vmatprep.subr.bf16.mxu0 %v2033_v6  ;;  %2012 = vmatprep.subr.bf16.mxu1 %v2033_v6  ;;  %s2113_s17 = scalar_lea.vmem %s1515_s3, 4096  ;;  %p2118_p3 = scmp.lt.s32.totalorder %s1515_s3, %s1515_s3 }
  0x36   :  { %p2114_p2 = scmp.ne.s32.totalorder %s1515_s3, %s2113_s17  ;;  %p2119_p4 = scmp.lt.s32.totalorder %s2113_s17, %s2113_s17 }
  0x38   :  { %1937 = vmatpush3.bf16.msra.mxu0 %v2033_v6  ;;  %2020 = vmatpush3.bf16.msra.mxu1 %v2033_v6  ;;  %p2120_p5 = por %p2119_p4, %p2118_p3 }
  0x39   :  { %1938 = vmatprep.subr.bf16.mxu0 %v2034_v7  ;;  %2013 = vmatprep.subr.bf16.mxu1 %v2034_v7 }
  0x3a   :  { %p2121_p6 = pnand %p2120_p5, %p2114_p2 }
  0x3c   :  { %1939 = vmatpush3.bf16.msra.mxu0 %v2034_v7  ;;  %2021 = vmatpush3.bf16.msra.mxu1 %v2034_v7 }
  0x3d   :  { %1940 = vmatprep.subr.bf16.mxu0 %v2035_v8  ;;  %2014 = vmatprep.subr.bf16.mxu1 %v2035_v8 }
  0x40   :  { %1941 = vmatpush3.bf16.msra.mxu0 %v2035_v8  ;;  %2022 = vmatpush3.bf16.msra.mxu1 %v2035_v8 }
  0x41   :  { %1942 = vmatprep.subr.bf16.mxu0 %v2036_v9  ;;  %2015 = vmatprep.subr.bf16.mxu1 %v2036_v9 }
  0x44   :  { %1943 = vmatpush3.bf16.msra.mxu0 %v2036_v9  ;;  %2023 = vmatpush3.bf16.msra.mxu1 %v2036_v9 }
  0x47   :  { %1945 = vmatmul.mubr.bf16.vlgmr.msra.gmra.mrb[0].mxu0 %v2039_v10  ;;  %1977 = vmatmul.mubr.bf16.vlgmr.msra.gmra.mrb[0].mxu1 %v2040_v11 }
  0x48   :  { %1948 = vmatprep.mubr.bf16.mxu0 %v2041_v12  ;;  %1980 = vmatprep.mubr.bf16.mxu1 %v2042_v13 }
  0x4f   :  { %1949 = vmatmul.mubr.bf16.gmra.mrb[4].mxu0 %v2043_v14  ;;  %1981 = vmatmul.mubr.bf16.gmra.mrb[4].mxu1 %v2044_v15 }
  0x50   :  { %1952 = vmatprep.mubr.bf16.mxu0 %v2045_v16  ;;  %1984 = vmatprep.mubr.bf16.mxu1 %v2046_v17 }
  0x57   :  { %1953 = vmatmul.mubr.bf16.gmra.mrb[8].mxu0 %v2047_v18  ;;  %1985 = vmatmul.mubr.bf16.gmra.mrb[8].mxu1 %v2048_v19 }
  0x58   :  { %1956 = vmatprep.mubr.bf16.mxu0 %v2049_v20  ;;  %1988 = vmatprep.mubr.bf16.mxu1 %v2050_v21 }
  0x5f   :  { %1957 = vmatmul.mubr.bf16.gmra.mrb[12].mxu0 %v2051_v22  ;;  %1989 = vmatmul.mubr.bf16.gmra.mrb[12].mxu1 %v2052_v23 }
  0x60   :  { %1960 = vmatprep.mubr.bf16.mxu0 %v2053_v24  ;;  %1992 = vmatprep.mubr.bf16.mxu1 %v2054_v25 }
  0x67   :  { %1961 = vmatmul.mubr.bf16.gmra.mrb[16].mxu0 %v2055_v26  ;;  %1993 = vmatmul.mubr.bf16.gmra.mrb[16].mxu1 %v2056_v27 }
  0x68   :  { %1964 = vmatprep.mubr.bf16.mxu0 %v2057_v28  ;;  %1996 = vmatprep.mubr.bf16.mxu1 %v2058_v29 }
  0x6f   :  { %1965 = vmatmul.mubr.bf16.gmra.mrb[20].mxu0 %v2059_v30  ;;  %1997 = vmatmul.mubr.bf16.gmra.mrb[20].mxu1 %v2060_v31 }
  0x70   :  { %1968 = vmatprep.mubr.bf16.mxu0 %v2061_v32  ;;  %2000 = vmatprep.mubr.bf16.mxu1 %v2062_v33 }
  0x77   :  { %1969 = vmatmul.mubr.bf16.gmra.mrb[24].mxu0 %v2063_v34  ;;  %2001 = vmatmul.mubr.bf16.gmra.mrb[24].mxu1 %v2064_v35 }
  0x78   :  { %1972 = vmatprep.mubr.bf16.mxu0 %v2065_v36  ;;  %2004 = vmatprep.mubr.bf16.mxu1 %v2066_v37 }
  0x7f   :  { %1973 = vmatmul.mubr.bf16.gmra.mrb[28].mxu0 %v2067_v38  ;;  %2005 = vmatmul.mubr.bf16.gmra.mrb[28].mxu1 %v2068_v39 }
 0x11a   :  { %v1946_v41 = vpop.f32.mrb[0].mxu0  ;;  %v1978_v43 = vpop.f32.mrb[0].mxu1 }
 0x11b   :  { %v992_v44 = vmul.f32 %v1946_v41, %v2204_v40  ;;  %v1024_v45 = vmul.f32 %v1978_v43, %v2204_v40  ;;  %v533_v46 = vpop.f32.mrb[1].mxu0  ;;  %v661_v47 = vpop.f32.mrb[1].mxu1 }
 0x11c   :  { %v990_v48 = vmul.f32 %v2204_v40, %v533_v46  ;;  %v1022_v49 = vmul.f32 %v2204_v40, %v661_v47  ;;  %v1947_v50 = vpop.f32.mrb[2].mxu0  ;;  %v1979_v51 = vpop.f32.mrb[2].mxu1 }
 0x11d   :  { %v1063_v52 = vadd.f32 %v2209_v42, %v992_v44  ;;  %v1095_v53 = vadd.f32 %v2209_v42, %v1024_v45  ;;  %v993_v54 = vmul.f32 %v1947_v50, %v2204_v40  ;;  %v1025_v55 = vmul.f32 %v1979_v51, %v2204_v40  ;;  %v536_v56 = vpop.f32.mrb[3].mxu0  ;;  %v664_v57 = vpop.f32.mrb[3].mxu1 }
 0x11e   :  { %v1061_v58 = vadd.f32 %v2209_v42, %v990_v48  ;;  %v1093_v59 = vadd.f32 %v2209_v42, %v1022_v49  ;;  %v991_v60 = vmul.f32 %v2204_v40, %v536_v56  ;;  %v1023_v61 = vmul.f32 %v2204_v40, %v664_v57 }
 0x11f   :  { %v1064_v62 = vadd.f32 %v2209_v42, %v993_v54  ;;  %v1096_v63 = vadd.f32 %v2209_v42, %v1025_v55  ;;  %v1127_v2 = vmax.f32 %v1063_v52, 0.0  ;;  %v1159_v3 = vmax.f32 %v1095_v53, 0.0 }
 0x120   :  { %v1062_v0 = vadd.f32 %v2209_v42, %v991_v60  ;;  %v1094_v1 = vadd.f32 %v2209_v42, %v1023_v61  ;;  %v1125_v6 = vmax.f32 %v1061_v58, 0.0  ;;  %v1157_v7 = vmax.f32 %v1093_v59, 0.0 }
 0x121   :  { %v1128_v4 = vmax.f32 %v1064_v62, 0.0  ;;  %v1160_v5 = vmax.f32 %v1096_v63, 0.0 }
 0x122   :  { %v1126_v8 = vmax.f32 %v1062_v0, 0.0  ;;  %v1158_v9 = vmax.f32 %v1094_v1, 0.0  ;;  %v1950_v10 = vpop.f32.mrb[4].mxu0  ;;  %v1982_v11 = vpop.f32.mrb[4].mxu1 }
 0x123   :  { %v1705_v12 = vpack.c.bf16 %v1128_v4, %v1127_v2  ;;  %v1785_v13 = vpack.c.bf16 %v1160_v5, %v1159_v3  ;;  %v996_v14 = vmul.f32 %v1950_v10, %v2204_v40  ;;  %v1028_v15 = vmul.f32 %v1982_v11, %v2204_v40  ;;  %v549_v16 = vpop.f32.mrb[5].mxu0  ;;  %v677_v17 = vpop.f32.mrb[5].mxu1 }
 0x124   :  { %v1700_v18 = vpack.c.bf16 %v1126_v8, %v1125_v6  ;;  %v1780_v19 = vpack.c.bf16 %v1158_v9, %v1157_v7  ;;  %v994_v20 = vmul.f32 %v2204_v40, %v549_v16  ;;  %v1026_v21 = vmul.f32 %v2204_v40, %v677_v17  ;;  %v1951_v22 = vpop.f32.mrb[6].mxu0  ;;  %v1983_v23 = vpop.f32.mrb[6].mxu1 }
 0x125   :  { %1857 = vst [vmem:[#allocation8 + $0x8] sm:$0xff] %v1705_v12   ;;  %1873 = vst [vmem:[#allocation8 + $0x88] sm:$0xff] %v1785_v13   ;;  %v1067_v24 = vadd.f32 %v2209_v42, %v996_v14  ;;  %v1099_v25 = vadd.f32 %v2209_v42, %v1028_v15  ;;  %v997_v26 = vmul.f32 %v1951_v22, %v2204_v40  ;;  %v552_v28 = vpop.f32.mrb[7].mxu0  ;;  %v680_v29 = vpop.f32.mrb[7].mxu1 }
 0x126   :  { %v1029_v27 = vmul.f32 %v1983_v23, %v2204_v40  ;;  %1701 = vst [vmem:[#allocation8] sm:$0xff] %v1700_v18   ;;  %1872 = vst [vmem:[#allocation8 + $0x80] sm:$0xff] %v1780_v19   ;;  %v1065_v30 = vadd.f32 %v2209_v42, %v994_v20  ;;  %v1097_v31 = vadd.f32 %v2209_v42, %v1026_v21 }
 0x127   :  { %v995_v32 = vmul.f32 %v2204_v40, %v552_v28  ;;  %v1027_v33 = vmul.f32 %v2204_v40, %v680_v29  ;;  %v1068_v34 = vadd.f32 %v2209_v42, %v997_v26  ;;  %v1131_v38 = vmax.f32 %v1067_v24, 0.0 }
 0x128   :  { %v1100_v35 = vadd.f32 %v2209_v42, %v1029_v27  ;;  %v1163_v39 = vmax.f32 %v1099_v25, 0.0  ;;  %v1129_v44 = vmax.f32 %v1065_v30, 0.0  ;;  %v1161_v45 = vmax.f32 %v1097_v31, 0.0 }
 0x129   :  { %v1066_v36 = vadd.f32 %v2209_v42, %v995_v32  ;;  %v1098_v37 = vadd.f32 %v2209_v42, %v1027_v33  ;;  %v1132_v41 = vmax.f32 %v1068_v34, 0.0 }
 0x12a   :  { %v1164_v43 = vmax.f32 %v1100_v35, 0.0  ;;  %v1954_v48 = vpop.f32.mrb[8].mxu0  ;;  %v1986_v49 = vpop.f32.mrb[8].mxu1 }
 0x12b   :  { %v1130_v46 = vmax.f32 %v1066_v36, 0.0  ;;  %v1162_v47 = vmax.f32 %v1098_v37, 0.0  ;;  %v1715_v50 = vpack.c.bf16 %v1132_v41, %v1131_v38  ;;  %v1000_v52 = vmul.f32 %v1954_v48, %v2204_v40  ;;  %v565_v54 = vpop.f32.mrb[9].mxu0  ;;  %v693_v55 = vpop.f32.mrb[9].mxu1 }
 0x12c   :  { %v1795_v51 = vpack.c.bf16 %v1164_v43, %v1163_v39  ;;  %v1032_v53 = vmul.f32 %v1986_v49, %v2204_v40  ;;  %v998_v58 = vmul.f32 %v2204_v40, %v565_v54  ;;  %v1030_v59 = vmul.f32 %v2204_v40, %v693_v55  ;;  %v1955_v60 = vpop.f32.mrb[10].mxu0  ;;  %v1987_v61 = vpop.f32.mrb[10].mxu1 }
 0x12d   :  { %v1710_v56 = vpack.c.bf16 %v1130_v46, %v1129_v44  ;;  %v1790_v57 = vpack.c.bf16 %v1162_v47, %v1161_v45  ;;  %1859 = vst [vmem:[#allocation8 + $0x18] sm:$0xff] %v1715_v50   ;;  %v1071_v62 = vadd.f32 %v2209_v42, %v1000_v52  ;;  %v1001_v0 = vmul.f32 %v1955_v60, %v2204_v40  ;;  %v568_v2 = vpop.f32.mrb[11].mxu0  ;;  %v696_v3 = vpop.f32.mrb[11].mxu1 }
 0x12e   :  { %1875 = vst [vmem:[#allocation8 + $0x98] sm:$0xff] %v1795_v51   ;;  %v1103_v63 = vadd.f32 %v2209_v42, %v1032_v53  ;;  %v1033_v1 = vmul.f32 %v1987_v61, %v2204_v40  ;;  %v1069_v4 = vadd.f32 %v2209_v42, %v998_v58  ;;  %v1101_v5 = vadd.f32 %v2209_v42, %v1030_v59 }
 0x12f   :  { %1858 = vst [vmem:[#allocation8 + $0x10] sm:$0xff] %v1710_v56   ;;  %1874 = vst [vmem:[#allocation8 + $0x90] sm:$0xff] %v1790_v57   ;;  %v999_v6 = vmul.f32 %v2204_v40, %v568_v2  ;;  %v1031_v7 = vmul.f32 %v2204_v40, %v696_v3  ;;  %v1072_v8 = vadd.f32 %v2209_v42, %v1001_v0  ;;  %v1135_v12 = vmax.f32 %v1071_v62, 0.0 }
 0x130   :  { %v1104_v9 = vadd.f32 %v2209_v42, %v1033_v1  ;;  %v1167_v13 = vmax.f32 %v1103_v63, 0.0  ;;  %v1133_v16 = vmax.f32 %v1069_v4, 0.0  ;;  %v1165_v17 = vmax.f32 %v1101_v5, 0.0 }
 0x131   :  { %v1070_v10 = vadd.f32 %v2209_v42, %v999_v6  ;;  %v1102_v11 = vadd.f32 %v2209_v42, %v1031_v7  ;;  %v1136_v14 = vmax.f32 %v1072_v8, 0.0 }
 0x132   :  { %v1168_v15 = vmax.f32 %v1104_v9, 0.0  ;;  %v1958_v20 = vpop.f32.mrb[12].mxu0  ;;  %v1990_v21 = vpop.f32.mrb[12].mxu1 }
 0x133   :  { %v1134_v18 = vmax.f32 %v1070_v10, 0.0  ;;  %v1166_v19 = vmax.f32 %v1102_v11, 0.0  ;;  %v1725_v22 = vpack.c.bf16 %v1136_v14, %v1135_v12  ;;  %v1004_v24 = vmul.f32 %v1958_v20, %v2204_v40  ;;  %v581_v26 = vpop.f32.mrb[13].mxu0  ;;  %v709_v27 = vpop.f32.mrb[13].mxu1 }
 0x134   :  { %v1805_v23 = vpack.c.bf16 %v1168_v15, %v1167_v13  ;;  %v1036_v25 = vmul.f32 %v1990_v21, %v2204_v40  ;;  %v1002_v30 = vmul.f32 %v2204_v40, %v581_v26  ;;  %v1034_v31 = vmul.f32 %v2204_v40, %v709_v27  ;;  %v1959_v32 = vpop.f32.mrb[14].mxu0  ;;  %v1991_v33 = vpop.f32.mrb[14].mxu1 }
 0x135   :  { %v1720_v28 = vpack.c.bf16 %v1134_v18, %v1133_v16  ;;  %v1800_v29 = vpack.c.bf16 %v1166_v19, %v1165_v17  ;;  %1861 = vst [vmem:[#allocation8 + $0x28] sm:$0xff] %v1725_v22   ;;  %v1075_v34 = vadd.f32 %v2209_v42, %v1004_v24  ;;  %v1005_v36 = vmul.f32 %v1959_v32, %v2204_v40  ;;  %v584_v38 = vpop.f32.mrb[15].mxu0  ;;  %v712_v39 = vpop.f32.mrb[15].mxu1 }
 0x136   :  { %1877 = vst [vmem:[#allocation8 + $0xa8] sm:$0xff] %v1805_v23   ;;  %v1107_v35 = vadd.f32 %v2209_v42, %v1036_v25  ;;  %v1037_v37 = vmul.f32 %v1991_v33, %v2204_v40  ;;  %v1073_v41 = vadd.f32 %v2209_v42, %v1002_v30  ;;  %v1105_v43 = vadd.f32 %v2209_v42, %v1034_v31 }
 0x137   :  { %1860 = vst [vmem:[#allocation8 + $0x20] sm:$0xff] %v1720_v28   ;;  %1876 = vst [vmem:[#allocation8 + $0xa0] sm:$0xff] %v1800_v29   ;;  %v1003_v44 = vmul.f32 %v2204_v40, %v584_v38  ;;  %v1035_v45 = vmul.f32 %v2204_v40, %v712_v39  ;;  %v1076_v46 = vadd.f32 %v2209_v42, %v1005_v36  ;;  %v1139_v50 = vmax.f32 %v1075_v34, 0.0 }
 0x138   :  { %v1108_v47 = vadd.f32 %v2209_v42, %v1037_v37  ;;  %v1171_v51 = vmax.f32 %v1107_v35, 0.0  ;;  %v1137_v54 = vmax.f32 %v1073_v41, 0.0  ;;  %v1169_v55 = vmax.f32 %v1105_v43, 0.0 }
 0x139   :  { %v1074_v48 = vadd.f32 %v2209_v42, %v1003_v44  ;;  %v1106_v49 = vadd.f32 %v2209_v42, %v1035_v45  ;;  %v1140_v52 = vmax.f32 %v1076_v46, 0.0 }
 0x13a   :  { %v1172_v53 = vmax.f32 %v1108_v47, 0.0  ;;  %v1962_v58 = vpop.f32.mrb[16].mxu0  ;;  %v1994_v59 = vpop.f32.mrb[16].mxu1 }
 0x13b   :  { %v1138_v56 = vmax.f32 %v1074_v48, 0.0  ;;  %v1170_v57 = vmax.f32 %v1106_v49, 0.0  ;;  %v1735_v60 = vpack.c.bf16 %v1140_v52, %v1139_v50  ;;  %v1008_v62 = vmul.f32 %v1962_v58, %v2204_v40  ;;  %v597_v0 = vpop.f32.mrb[17].mxu0  ;;  %v725_v1 = vpop.f32.mrb[17].mxu1 }
 0x13c   :  { %v1815_v61 = vpack.c.bf16 %v1172_v53, %v1171_v51  ;;  %v1040_v63 = vmul.f32 %v1994_v59, %v2204_v40  ;;  %v1006_v4 = vmul.f32 %v2204_v40, %v597_v0  ;;  %v1038_v5 = vmul.f32 %v2204_v40, %v725_v1  ;;  %v1963_v6 = vpop.f32.mrb[18].mxu0  ;;  %v1995_v7 = vpop.f32.mrb[18].mxu1 }
 0x13d   :  { %v1730_v2 = vpack.c.bf16 %v1138_v56, %v1137_v54  ;;  %v1810_v3 = vpack.c.bf16 %v1170_v57, %v1169_v55  ;;  %1863 = vst [vmem:[#allocation8 + $0x38] sm:$0xff] %v1735_v60   ;;  %v1079_v8 = vadd.f32 %v2209_v42, %v1008_v62  ;;  %v1009_v10 = vmul.f32 %v1963_v6, %v2204_v40  ;;  %v600_v12 = vpop.f32.mrb[19].mxu0  ;;  %v728_v13 = vpop.f32.mrb[19].mxu1 }
 0x13e   :  { %1879 = vst [vmem:[#allocation8 + $0xb8] sm:$0xff] %v1815_v61   ;;  %v1111_v9 = vadd.f32 %v2209_v42, %v1040_v63  ;;  %v1041_v11 = vmul.f32 %v1995_v7, %v2204_v40  ;;  %v1077_v14 = vadd.f32 %v2209_v42, %v1006_v4  ;;  %v1109_v15 = vadd.f32 %v2209_v42, %v1038_v5 }
 0x13f   :  { %1862 = vst [vmem:[#allocation8 + $0x30] sm:$0xff] %v1730_v2   ;;  %1878 = vst [vmem:[#allocation8 + $0xb0] sm:$0xff] %v1810_v3   ;;  %v1007_v16 = vmul.f32 %v2204_v40, %v600_v12  ;;  %v1039_v17 = vmul.f32 %v2204_v40, %v728_v13  ;;  %v1080_v18 = vadd.f32 %v2209_v42, %v1009_v10  ;;  %v1143_v22 = vmax.f32 %v1079_v8, 0.0 }
 0x140   :  { %v1112_v19 = vadd.f32 %v2209_v42, %v1041_v11  ;;  %v1175_v23 = vmax.f32 %v1111_v9, 0.0  ;;  %v1141_v26 = vmax.f32 %v1077_v14, 0.0  ;;  %v1173_v27 = vmax.f32 %v1109_v15, 0.0 }
 0x141   :  { %v1078_v20 = vadd.f32 %v2209_v42, %v1007_v16  ;;  %v1110_v21 = vadd.f32 %v2209_v42, %v1039_v17  ;;  %v1144_v24 = vmax.f32 %v1080_v18, 0.0 }
 0x142   :  { %v1176_v25 = vmax.f32 %v1112_v19, 0.0  ;;  %v1966_v30 = vpop.f32.mrb[20].mxu0  ;;  %v1998_v31 = vpop.f32.mrb[20].mxu1 }
 0x143   :  { %v1142_v28 = vmax.f32 %v1078_v20, 0.0  ;;  %v1174_v29 = vmax.f32 %v1110_v21, 0.0  ;;  %v1745_v32 = vpack.c.bf16 %v1144_v24, %v1143_v22  ;;  %v1012_v34 = vmul.f32 %v1966_v30, %v2204_v40  ;;  %v613_v36 = vpop.f32.mrb[21].mxu0  ;;  %v741_v37 = vpop.f32.mrb[21].mxu1 }
 0x144   :  { %v1825_v33 = vpack.c.bf16 %v1176_v25, %v1175_v23  ;;  %v1044_v35 = vmul.f32 %v1998_v31, %v2204_v40  ;;  %v1010_v41 = vmul.f32 %v2204_v40, %v613_v36  ;;  %v1042_v43 = vmul.f32 %v2204_v40, %v741_v37  ;;  %v1967_v44 = vpop.f32.mrb[22].mxu0  ;;  %v1999_v45 = vpop.f32.mrb[22].mxu1 }
 0x145   :  { %v1740_v38 = vpack.c.bf16 %v1142_v28, %v1141_v26  ;;  %v1820_v39 = vpack.c.bf16 %v1174_v29, %v1173_v27  ;;  %1865 = vst [vmem:[#allocation8 + $0x48] sm:$0xff] %v1745_v32   ;;  %v1083_v46 = vadd.f32 %v2209_v42, %v1012_v34  ;;  %v1013_v48 = vmul.f32 %v1967_v44, %v2204_v40  ;;  %v616_v50 = vpop.f32.mrb[23].mxu0  ;;  %v744_v51 = vpop.f32.mrb[23].mxu1 }
 0x146   :  { %1881 = vst [vmem:[#allocation8 + $0xc8] sm:$0xff] %v1825_v33   ;;  %v1115_v47 = vadd.f32 %v2209_v42, %v1044_v35  ;;  %v1045_v49 = vmul.f32 %v1999_v45, %v2204_v40  ;;  %v1081_v52 = vadd.f32 %v2209_v42, %v1010_v41  ;;  %v1113_v53 = vadd.f32 %v2209_v42, %v1042_v43 }
 0x147   :  { %1864 = vst [vmem:[#allocation8 + $0x40] sm:$0xff] %v1740_v38   ;;  %1880 = vst [vmem:[#allocation8 + $0xc0] sm:$0xff] %v1820_v39   ;;  %v1011_v54 = vmul.f32 %v2204_v40, %v616_v50  ;;  %v1043_v55 = vmul.f32 %v2204_v40, %v744_v51  ;;  %v1084_v56 = vadd.f32 %v2209_v42, %v1013_v48  ;;  %v1147_v60 = vmax.f32 %v1083_v46, 0.0 }
 0x148   :  { %v1116_v57 = vadd.f32 %v2209_v42, %v1045_v49  ;;  %v1179_v61 = vmax.f32 %v1115_v47, 0.0  ;;  %v1145_v0 = vmax.f32 %v1081_v52, 0.0  ;;  %v1177_v1 = vmax.f32 %v1113_v53, 0.0 }
 0x149   :  { %v1082_v58 = vadd.f32 %v2209_v42, %v1011_v54  ;;  %v1114_v59 = vadd.f32 %v2209_v42, %v1043_v55  ;;  %v1148_v62 = vmax.f32 %v1084_v56, 0.0 }
 0x14a   :  { %v1180_v63 = vmax.f32 %v1116_v57, 0.0  ;;  %v1970_v4 = vpop.f32.mrb[24].mxu0  ;;  %v2002_v5 = vpop.f32.mrb[24].mxu1 }
 0x14b   :  { %v1146_v2 = vmax.f32 %v1082_v58, 0.0  ;;  %v1178_v3 = vmax.f32 %v1114_v59, 0.0  ;;  %v1755_v6 = vpack.c.bf16 %v1148_v62, %v1147_v60  ;;  %v1016_v8 = vmul.f32 %v1970_v4, %v2204_v40  ;;  %v629_v10 = vpop.f32.mrb[25].mxu0  ;;  %v757_v11 = vpop.f32.mrb[25].mxu1 }
 0x14c   :  { %v1835_v7 = vpack.c.bf16 %v1180_v63, %v1179_v61  ;;  %v1048_v9 = vmul.f32 %v2002_v5, %v2204_v40  ;;  %v1014_v14 = vmul.f32 %v2204_v40, %v629_v10  ;;  %v1046_v15 = vmul.f32 %v2204_v40, %v757_v11  ;;  %v1971_v16 = vpop.f32.mrb[26].mxu0  ;;  %v2003_v17 = vpop.f32.mrb[26].mxu1 }
 0x14d   :  { %v1750_v12 = vpack.c.bf16 %v1146_v2, %v1145_v0  ;;  %v1830_v13 = vpack.c.bf16 %v1178_v3, %v1177_v1  ;;  %1867 = vst [vmem:[#allocation8 + $0x58] sm:$0xff] %v1755_v6   ;;  %v1087_v18 = vadd.f32 %v2209_v42, %v1016_v8  ;;  %v1017_v20 = vmul.f32 %v1971_v16, %v2204_v40  ;;  %v632_v22 = vpop.f32.mrb[27].mxu0  ;;  %v760_v23 = vpop.f32.mrb[27].mxu1 }
 0x14e   :  { %1883 = vst [vmem:[#allocation8 + $0xd8] sm:$0xff] %v1835_v7   ;;  %v1119_v19 = vadd.f32 %v2209_v42, %v1048_v9  ;;  %v1049_v21 = vmul.f32 %v2003_v17, %v2204_v40  ;;  %v1085_v24 = vadd.f32 %v2209_v42, %v1014_v14  ;;  %v1117_v25 = vadd.f32 %v2209_v42, %v1046_v15 }
 0x14f   :  { %1866 = vst [vmem:[#allocation8 + $0x50] sm:$0xff] %v1750_v12   ;;  %1882 = vst [vmem:[#allocation8 + $0xd0] sm:$0xff] %v1830_v13   ;;  %v1015_v26 = vmul.f32 %v2204_v40, %v632_v22  ;;  %v1047_v27 = vmul.f32 %v2204_v40, %v760_v23  ;;  %v1088_v28 = vadd.f32 %v2209_v42, %v1017_v20  ;;  %v1151_v32 = vmax.f32 %v1087_v18, 0.0 }
 0x150   :  { %v1120_v29 = vadd.f32 %v2209_v42, %v1049_v21  ;;  %v1183_v33 = vmax.f32 %v1119_v19, 0.0  ;;  %v1149_v36 = vmax.f32 %v1085_v24, 0.0  ;;  %v1181_v37 = vmax.f32 %v1117_v25, 0.0 }
 0x151   :  { %v1086_v30 = vadd.f32 %v2209_v42, %v1015_v26  ;;  %v1118_v31 = vadd.f32 %v2209_v42, %v1047_v27  ;;  %v1152_v34 = vmax.f32 %v1088_v28, 0.0 }
 0x152   :  { %v1184_v35 = vmax.f32 %v1120_v29, 0.0  ;;  %v1974_v41 = vpop.f32.mrb[28].mxu0  ;;  %v2006_v43 = vpop.f32.mrb[28].mxu1 }
 0x153   :  { %v1150_v38 = vmax.f32 %v1086_v30, 0.0  ;;  %v1182_v39 = vmax.f32 %v1118_v31, 0.0  ;;  %v1765_v44 = vpack.c.bf16 %v1152_v34, %v1151_v32  ;;  %v1020_v46 = vmul.f32 %v1974_v41, %v2204_v40  ;;  %v645_v48 = vpop.f32.mrb[29].mxu0  ;;  %v773_v49 = vpop.f32.mrb[29].mxu1 }
 0x154   :  { %v1845_v45 = vpack.c.bf16 %v1184_v35, %v1183_v33  ;;  %v1052_v47 = vmul.f32 %v2006_v43, %v2204_v40  ;;  %v1018_v52 = vmul.f32 %v2204_v40, %v645_v48  ;;  %v1050_v53 = vmul.f32 %v2204_v40, %v773_v49  ;;  %v1975_v54 = vpop.f32.mrb[30].mxu0  ;;  %v2007_v55 = vpop.f32.mrb[30].mxu1 }
 0x155   :  { %v1760_v50 = vpack.c.bf16 %v1150_v38, %v1149_v36  ;;  %v1840_v51 = vpack.c.bf16 %v1182_v39, %v1181_v37  ;;  %1869 = vst [vmem:[#allocation8 + $0x68] sm:$0xff] %v1765_v44   ;;  %v1091_v56 = vadd.f32 %v2209_v42, %v1020_v46  ;;  %v1021_v58 = vmul.f32 %v1975_v54, %v2204_v40  ;;  %v648_v60 = vpop.f32.mrb[31].mxu0  ;;  %v776_v61 = vpop.f32.mrb[31].mxu1 }
 0x156   :  { %1885 = vst [vmem:[#allocation8 + $0xe8] sm:$0xff] %v1845_v45   ;;  %v1123_v57 = vadd.f32 %v2209_v42, %v1052_v47  ;;  %v1053_v59 = vmul.f32 %v2007_v55, %v2204_v40  ;;  %v1089_v62 = vadd.f32 %v2209_v42, %v1018_v52  ;;  %v1121_v63 = vadd.f32 %v2209_v42, %v1050_v53 }
 0x157   :  { %1868 = vst [vmem:[#allocation8 + $0x60] sm:$0xff] %v1760_v50   ;;  %1884 = vst [vmem:[#allocation8 + $0xe0] sm:$0xff] %v1840_v51   ;;  %v1019_v0 = vmul.f32 %v2204_v40, %v648_v60  ;;  %v1051_v1 = vmul.f32 %v2204_v40, %v776_v61  ;;  %v1092_v2 = vadd.f32 %v2209_v42, %v1021_v58  ;;  %v1155_v6 = vmax.f32 %v1091_v56, 0.0 }
 0x158   :  { %v1124_v3 = vadd.f32 %v2209_v42, %v1053_v59  ;;  %v1187_v7 = vmax.f32 %v1123_v57, 0.0  ;;  %v1153_v10 = vmax.f32 %v1089_v62, 0.0  ;;  %v1185_v11 = vmax.f32 %v1121_v63, 0.0 }
 0x159   :  { %v1090_v4 = vadd.f32 %v2209_v42, %v1019_v0  ;;  %v1122_v5 = vadd.f32 %v2209_v42, %v1051_v1  ;;  %v1156_v8 = vmax.f32 %v1092_v2, 0.0 }
 0x15a   :  { %v1188_v9 = vmax.f32 %v1124_v3, 0.0 }
 0x15b   :  { %v1154_v12 = vmax.f32 %v1090_v4, 0.0  ;;  %v1186_v13 = vmax.f32 %v1122_v5, 0.0  ;;  %v1775_v14 = vpack.c.bf16 %v1156_v8, %v1155_v6 }
 0x15c   :  { %v1855_v40 = vpack.c.bf16 %v1188_v9, %v1187_v7 }
 0x15d   :  { %v1770_v15 = vpack.c.bf16 %v1154_v12, %v1153_v10  ;;  %v1850_v16 = vpack.c.bf16 %v1186_v13, %v1185_v11  ;;  %1871 = vst [vmem:[#allocation8 + $0x78] sm:$0xff] %v1775_v14  }
 0x15e   :  { %1887 = vst [vmem:[#allocation8 + $0xf8] sm:$0xff] %v1855_v40  }
 0x15f   :  { %1870 = vst [vmem:[#allocation8 + $0x70] sm:$0xff] %v1770_v15   ;;  %1886 = vst [vmem:[#allocation8 + $0xf0] sm:$0xff] %v1850_v16  }
 0x160   :  { %2124 = shalt.err (!%p2121_p6)
}
 0x161   :  { %s2125_s20 = scalar_lea.hbm %s2358_s4, 4096 }
 0x162   :  { %p2126_p7 = scmp.ne.s32.totalorder %s2358_s4, %s2125_s20  ;;  %p2129_p8 = scmp.lt.u32.totalorder %s2125_s20, %s2358_s4 }
 0x164   :  { %p2131_p9 = pnand %p2129_p8, %p2126_p7 }
 0x166   :  { %2134 = shalt.err (!%p2131_p9)
}
 0x167   :  { %1520 = dma.vmem_to_hbm [thread:$0]  %s1515_s3, 4096, %s2358_s4, [#allocation5], %s2142_s25, %s2142_s25, %s2143_s26  }
 0x168   :  { %2139 = dma.done.wait [#allocation5], 4096  }
 0x169   :  { %2140 = vsyncadd [#allocation5], 4294963200 }
 0x16a   :  { %1524 = vsyncpa [#allocation4], 1 }
 0x16b   :  { %1525 = vsyncpa [#allocation7], 1 }
 0x16c   :  { %1526 = vsyncpa [#allocation5], 1 }

</bundles_post_ra>
